<compile_context>
chip_gen: v7x
topology: tpu7x:2x2x1
jax: 0.10.0
libtpu: 0.0.40
codegen_flags: <defaults>
</compile_context>

<pallas_src>
import jax
import jax.numpy as jnp
from jax.experimental import pallas as pl
from jax.experimental.pallas import tpu as pltpu

_LANES = 1024                    # lane width: large multiple of 128 -> unmasked vst
_MAX_TILE_ROWS = 1024            # 1024 x 1024 f32 = 4 MiB per tile
_SMALL_MAX_ROWS = 2048           # slab <= 8 MiB -> single fused VMEM-resident kernel
_VMEM_LIMIT = 48 * 1024 * 1024   # > v5e 16 MiB scoped default, < v7x 64 MiB physical


def _round_up(x, m):
    return ((x + m - 1) // m) * m


def _flow_math(d, a0, a1, b0, b1, m):
    """Folded OptAEGV3 flow.

    With a0 = 0.5*afactor*(1+vy), a1 = 0.5*afactor*vx,
         b0 = 0.5*(1+wy),          b1 = 0.5*wx,          m = mfactor:
      v' = d*a0 + a1                       (= 0.5*afactor*v)
      w' = d*b0 + b1                       (= w/2)
      dx = afactor*v*sigmoid(w)            = v'*(1 + tanh(w'))
      out = d*(1 + m*tanh(d)) + dx
    tanh keeps the transcendentals on the EUP and avoids an f32 divide on the VALU.
    """
    vp = d * a0 + a1
    wp = d * b0 + b1
    dx = vp * (jnp.tanh(wp) + 1.0)
    return d + (m * d) * jnp.tanh(d) + dx


# -------- small-tensor fast path: stats + flow fused in one VMEM-resident kernel ----
def _fused_small_kernel(scal_ref, x_ref, o_ref):
    # scal_ref: SMEM f32[7] = [a0, a1, b0, b1, mfactor, n, n_pad]
    a0, a1, b0, b1 = scal_ref[0], scal_ref[1], scal_ref[2], scal_ref[3]
    m, nf, n_pad = scal_ref[4], scal_ref[5], scal_ref[6]

    x = x_ref[...].astype(jnp.float32)
    mean = jnp.sum(x) / nf                       # padded zeros add 0 to the sum
    xc = x - mean
    # each zero-padded element contributed exactly mean^2 to the centered sum
    ssq = jnp.maximum(jnp.sum(xc * xc) - n_pad * mean * mean, 0.0)
    inv_std = jax.lax.rsqrt(ssq / jnp.maximum(nf - 1.0, 1.0))   # ddof=1, n==1 guarded
    d = xc * inv_std
    o_ref[...] = _flow_math(d, a0, a1, b0, b1, m).astype(o_ref.dtype)


# -------- large path, pass A: fused per-lane shifted sum + sum-of-squares ----------
def _stats_kernel(shift_ref, x_ref, out_ref):
    # out_ref block (1, 2, LANES): row 0 = per-lane sum(x - shift),
    #                              row 1 = per-lane sum((x - shift)^2)
    xs = x_ref[...].astype(jnp.float32) - shift_ref[0]
    s = jnp.sum(xs, axis=0, keepdims=True)
    sq = jnp.sum(xs * xs, axis=0, keepdims=True)
    out_ref[...] = jnp.concatenate([s, sq], axis=0)[None]


# -------- large path, pass B: streaming elementwise flow with folded scalars -------
def _flow_kernel(scal_ref, x_ref, o_ref):
    # scal_ref: SMEM f32[7] = [c0, c1, a0, a1, b0, b1, mfactor];  d = x*c0 + c1
    c0, c1 = scal_ref[0], scal_ref[1]
    a0, a1, b0, b1 = scal_ref[2], scal_ref[3], scal_ref[4], scal_ref[5]
    m = scal_ref[6]
    d = x_ref[...].astype(jnp.float32) * c0 + c1
    o_ref[...] = _flow_math(d, a0, a1, b0, b1, m).astype(o_ref.dtype)


@jax.jit
def optaeg_v3_forward(x, params):
    """OptAEGV3 forward. x: (B, ...) float tensor; params: (6,) f32 =
    [vx, vy, wx, wy, afactor, mfactor]."""
    shape = x.shape
    n = x.size
    flat = x.reshape(-1)

    vx, vy, wx, wy, afactor, mfactor = (params[i].astype(jnp.float32)
                                        for i in range(6))
    # Scalar folding (free wrapper-side scalar math, not a tensor pre-scale).
    a0 = 0.5 * afactor * (1.0 + vy)
    a1 = 0.5 * afactor * vx
    b0 = 0.5 * (1.0 + wy)
    b1 = 0.5 * wx

    rows = pl.cdiv(n, _LANES)
    smem_spec = pl.BlockSpec(memory_space=pltpu.MemorySpace.SMEM)
    vmem_spec = pl.BlockSpec(memory_space=pltpu.MemorySpace.VMEM)

    # ----------------- small-tensor fast path: one fused launch -----------------
    if rows <= _SMALL_MAX_ROWS:
        n_pad = rows * _LANES - n
        slab = flat if n_pad == 0 else jnp.pad(flat, (0, n_pad))
        slab = slab.reshape(rows, _LANES)
        scalars = jnp.stack([a0, a1, b0, b1, mfactor,
                             jnp.float32(n), jnp.float32(n_pad)])
        out_slab = pl.pallas_call(
            _fused_small_kernel,
            out_shape=jax.ShapeDtypeStruct((rows, _LANES), x.dtype),
            in_specs=[smem_spec, vmem_spec],
            out_specs=vmem_spec,
            compiler_params=pltpu.CompilerParams(vmem_limit_bytes=_VMEM_LIMIT),
        )(scalars, slab)
        if n_pad == 0:
            return out_slab.reshape(shape)
        return out_slab.reshape(-1)[:n].reshape(shape)

    # ----------------- large path: fused stats sweep + flow sweep ---------------
    num_tiles = pl.cdiv(rows, _MAX_TILE_ROWS)
    tile_rows = _round_up(pl.cdiv(rows, num_tiles), 8)   # bounded row-pad waste
    padded_rows = _round_up(rows, tile_rows)
    grid = (padded_rows // tile_rows,)
    n_pad = padded_rows * _LANES - n

    slab = flat if n_pad == 0 else jnp.pad(flat, (0, n_pad))
    slab = slab.reshape(padded_rows, _LANES)
    slab_spec = pl.BlockSpec((tile_rows, _LANES), lambda i: (i, 0))

    # pass A: per-tile shifted sums (single read of the slab).
    # shift = x[0] keeps the sum-of-squares well conditioned (no E[x^2]-E[x]^2).
    shift = flat[0].astype(jnp.float32)
    partials = pl.pallas_call(
        _stats_kernel,
        out_shape=jax.ShapeDtypeStruct((grid[0], 2, _LANES), jnp.float32),
        grid_spec=pltpu.PrefetchScalarGridSpec(
            num_scalar_prefetch=0,
            grid=grid,
            in_specs=[smem_spec, slab_spec],
            out_specs=pl.BlockSpec((1, 2, _LANES), lambda i: (i, 0, 0)),
        ),
        compiler_params=pltpu.CompilerParams(
            dimension_semantics=("parallel",),       # megacore-sharded on v7x
            vmem_limit_bytes=_VMEM_LIMIT),
    )(jnp.reshape(shift, (1,)), slab)

    # Each padded zero contributed (0 - shift) to S1 and shift^2 to S2.
    s1 = jnp.sum(partials[:, 0, :]) + jnp.float32(n_pad) * shift
    s2 = jnp.sum(partials[:, 1, :]) - jnp.float32(n_pad) * shift * shift
    mean = shift + s1 / jnp.float32(n)
    var = (s2 - s1 * s1 / jnp.float32(n)) / jnp.float32(max(n - 1, 1))  # ddof=1 guarded
    inv_std = jax.lax.rsqrt(jnp.maximum(var, 0.0))

    # pass B: streaming elementwise flow pass.
    c0 = inv_std
    c1 = -mean * inv_std
    scalars = jnp.stack([c0, c1, a0, a1, b0, b1, mfactor])
    out_slab = pl.pallas_call(
        _flow_kernel,
        out_shape=jax.ShapeDtypeStruct((padded_rows, _LANES), x.dtype),
        grid_spec=pltpu.PrefetchScalarGridSpec(
            num_scalar_prefetch=0,
            grid=grid,
            in_specs=[smem_spec, slab_spec],
            out_specs=slab_spec,
        ),
        compiler_params=pltpu.CompilerParams(
            dimension_semantics=("parallel",),
            vmem_limit_bytes=_VMEM_LIMIT),
    )(scalars, slab)

    if n_pad == 0:
        return out_slab.reshape(shape)
    return out_slab.reshape(-1)[:n].reshape(shape)


def _reference(x_nchw, params):
    """Pure-JAX reference mirroring the PyTorch module (sanity check)."""
    vx, vy, wx, wy, afactor, mfactor = [params[i] for i in range(6)]
    shape = x_nchw.shape
    b = shape[0]
    data = x_nchw.reshape(b, -1).astype(jnp.float32)
    data = data - jnp.mean(data)
    data = data / jnp.std(data, ddof=1)
    d3 = data[:, :, None]
    v = d3 * (1.0 + vy) + vx
    w = d3 * (1.0 + wy) + wx
    dx = afactor * jnp.sum(v * jax.nn.sigmoid(w), axis=-1)
    dy = mfactor * jnp.tanh(data)
    out = data * (1.0 + dy) + dx
    return out.reshape(shape)


if __name__ == "__main__":
    # Non-trivial parameters so every term (dx, dy, both affines) is exercised.
    params = jnp.array([0.1, 0.9, -0.2, 1.1, 0.3, 0.8], dtype=jnp.float32)

    # Small path (the module's typical MNIST-scale activation): one fused launch.
    x_small = jax.random.normal(jax.random.PRNGKey(0), (2, 4, 16, 16),
                                dtype=jnp.float32)
    out_s = jax.block_until_ready(optaeg_v3_forward(x_small, params))
    ref_s = _reference(x_small, params)
    assert out_s.shape == x_small.shape
    assert jnp.allclose(out_s, ref_s, atol=2e-5, rtol=2e-5), float(
        jnp.max(jnp.abs(out_s - ref_s)))

    # Large path: exercises the fused stats sweep + streaming flow sweep.
    x_big = jax.random.normal(jax.random.PRNGKey(1), (8, 32, 128, 128),
                              dtype=jnp.float32)
    out_b = jax.block_until_ready(optaeg_v3_forward(x_big, params))
    ref_b = _reference(x_big, params)
    assert out_b.shape == x_big.shape
    assert jnp.allclose(out_b, ref_b, atol=1e-3, rtol=1e-3), float(
        jnp.max(jnp.abs(out_b - ref_b)))

    print("KERNEL_OK")
</pallas_src>

<mosaic_0001>
module attributes {stable_mosaic.version = 11 : i64} {
  func.func @_fused_small_kernel(%arg0: memref<7xf32, #tpu.memory_space<smem>>, %arg1: memref<2x1024xf32, #tpu.memory_space<vmem>>, %arg2: memref<2x1024xf32, #tpu.memory_space<vmem>>) attributes {dimension_semantics = [], scalar_prefetch = 0 : i64, scratch_operands = 0 : i64, tpu.core_type = #tpu.core_type<tc>} {
    %c0 = arith.constant 0 : index
    %0 = memref.load %arg0[%c0] : memref<7xf32, #tpu.memory_space<smem>>
    %c1 = arith.constant 1 : index
    %1 = memref.load %arg0[%c1] : memref<7xf32, #tpu.memory_space<smem>>
    %c2 = arith.constant 2 : index
    %2 = memref.load %arg0[%c2] : memref<7xf32, #tpu.memory_space<smem>>
    %c3 = arith.constant 3 : index
    %3 = memref.load %arg0[%c3] : memref<7xf32, #tpu.memory_space<smem>>
    %c4 = arith.constant 4 : index
    %4 = memref.load %arg0[%c4] : memref<7xf32, #tpu.memory_space<smem>>
    %c5 = arith.constant 5 : index
    %5 = memref.load %arg0[%c5] : memref<7xf32, #tpu.memory_space<smem>>
    %c6 = arith.constant 6 : index
    %6 = memref.load %arg0[%c6] : memref<7xf32, #tpu.memory_space<smem>>
    %c0_0 = arith.constant 0 : index
    %c0_1 = arith.constant 0 : index
    %7 = vector.load %arg1[%c0_0, %c0_1] : memref<2x1024xf32, #tpu.memory_space<vmem>>, vector<2x1024xf32>
    %8 = vector.shape_cast %7 : vector<2x1024xf32> to vector<1x2x1024xf32>
    %cst = arith.constant dense<0.000000e+00> : vector<1xf32>
    %9 = vector.multi_reduction <add>, %8, %cst [1, 2] : vector<1x2x1024xf32> to vector<1xf32>
    %10 = vector.shape_cast %9 : vector<1xf32> to vector<1x1x1xf32>
    %11 = vector.extract %10[0, 0, 0] : f32 from vector<1x1x1xf32>
    %12 = arith.divf %11, %5 : f32
    %13 = vector.broadcast %12 : f32 to vector<2x1024xf32>
    %14 = arith.subf %7, %13 : vector<2x1024xf32>
    %15 = arith.mulf %14, %14 : vector<2x1024xf32>
    %16 = vector.shape_cast %15 : vector<2x1024xf32> to vector<1x2x1024xf32>
    %cst_2 = arith.constant dense<0.000000e+00> : vector<1xf32>
    %17 = vector.multi_reduction <add>, %16, %cst_2 [1, 2] : vector<1x2x1024xf32> to vector<1xf32>
    %18 = vector.shape_cast %17 : vector<1xf32> to vector<1x1x1xf32>
    %19 = vector.extract %18[0, 0, 0] : f32 from vector<1x1x1xf32>
    %20 = arith.mulf %6, %12 : f32
    %21 = arith.mulf %20, %12 : f32
    %22 = arith.subf %19, %21 : f32
    %cst_3 = arith.constant 0.000000e+00 : f32
    %23 = arith.maximumf %22, %cst_3 : f32
    %cst_4 = arith.constant 1.000000e+00 : f32
    %24 = arith.subf %5, %cst_4 : f32
    %cst_5 = arith.constant 1.000000e+00 : f32
    %25 = arith.maximumf %24, %cst_5 : f32
    %26 = arith.divf %23, %25 : f32
    %27 = math.rsqrt %26 : f32
    %28 = vector.broadcast %27 : f32 to vector<2x1024xf32>
    %29 = arith.mulf %14, %28 : vector<2x1024xf32>
    %30 = vector.broadcast %0 : f32 to vector<2x1024xf32>
    %31 = arith.mulf %29, %30 : vector<2x1024xf32>
    %32 = vector.broadcast %1 : f32 to vector<2x1024xf32>
    %33 = arith.addf %31, %32 : vector<2x1024xf32>
    %34 = vector.broadcast %2 : f32 to vector<2x1024xf32>
    %35 = arith.mulf %29, %34 : vector<2x1024xf32>
    %36 = vector.broadcast %3 : f32 to vector<2x1024xf32>
    %37 = arith.addf %35, %36 : vector<2x1024xf32>
    %38 = math.tanh %37 : vector<2x1024xf32>
    %cst_6 = arith.constant 1.000000e+00 : f32
    %39 = vector.broadcast %cst_6 : f32 to vector<2x1024xf32>
    %40 = arith.addf %38, %39 : vector<2x1024xf32>
    %41 = arith.mulf %33, %40 : vector<2x1024xf32>
    %42 = vector.broadcast %4 : f32 to vector<2x1024xf32>
    %43 = arith.mulf %42, %29 : vector<2x1024xf32>
    %44 = math.tanh %29 : vector<2x1024xf32>
    %45 = arith.mulf %43, %44 : vector<2x1024xf32>
    %46 = arith.addf %29, %45 : vector<2x1024xf32>
    %47 = arith.addf %46, %41 : vector<2x1024xf32>
    %c0_7 = arith.constant 0 : index
    %c0_8 = arith.constant 0 : index
    %48 = vector.load %arg2[%c0_7, %c0_8] : memref<2x1024xf32, #tpu.memory_space<vmem>>, vector<2x1024xf32>
    tpu.vector_store %arg2[%c0_7, %c0_8], %47 {strides = array<i32>} : memref<2x1024xf32, #tpu.memory_space<vmem>>, vector<2x1024xf32>,
    return
  }
}

</mosaic_0001>

<bundles_post_ra>
// kernel: optaeg_v3_forward.1
= control target key start
LH: loop header
LB: loop body
LE: loop exit
PB: predicated region body
PF: predicated region fallthrough
CT: control target
= control target key end

     0   :  { %7 = vsyncpa [#allocation3], 0  ;;  %s351_s0 = inlined_call_operand.vmem [shape: f32[7], index: 0, kind: input, shape index: {}]   ;;  %s352_s1 = inlined_call_operand.vmem [shape: f32[2,1024], index: 1, kind: input, shape index: {}]   ;;  %s353_s2 = inlined_call_operand.vmem [shape: f32[2,1024], index: 2, kind: output, shape index: {}]  }
   0x1   :  { %s14_s11 = sshll.u32 %s351_s0, 4  ;;  %s15_s11 = int_to_ptr.vmem [resolvable:$true] %s14_s11 }
   0x2   :  { %s268_s12 = scalar_lea.vmem %s15_s11, 16  ;;  %p273_p1 = scmp.lt.s32.totalorder %s15_s11, %s15_s11 }
   0x3   :  { %p269_p0 = scmp.ne.s32.totalorder %s15_s11, %s268_s12  ;;  %p274_p2 = scmp.lt.s32.totalorder %s268_s12, %s268_s12 }
   0x5   :  { %p275_p3 = por %p274_p2, %p273_p1 }
   0x7   :  { %p276_p4 = pnand %p275_p3, %p269_p0 }
   0x9   :  { %279 = shalt.err (!%p276_p4)
}
   0xa   :  { %s282_s13 = smov [#allocation2]  }
   0xb   :  { %17 = dma.vmem_to_smem %s15_s11, 16, %s282_s13, [#allocation3]  }
   0xc   :  { %280 = dma.done.wait [#allocation3], 16  }
   0xd   :  { %281 = vsyncadd [#allocation3], 4294967280 }
   0xe   :  { %23 = sfence }
   0xf   :  { %v39_v0 = vlaneseq  ;;  %v283_v1 = vmov 1983009808   ;;  %v31_v3 = vld [vmem:[%s352_s1] sm:$0xff]  ;;  %v32_v8 = vld [vmem:[%s352_s1 + $0x8] sm:$0xff]  ;;  %vm77_vm0 = vcmask 1041408   ;;  %s318_s1 = sld [smem:[#allocation2 + $0x5]] }
  0x10   :  { %v37_v2 = vunpack.c.l.s4 %v283_v1  ;;  %v35_v5 = vcombine.high %v31_v3, %v31_v3  ;;  %v52_v13 = vcombine.high %v32_v8, %v32_v8  ;;  %s284_s21 = smov 1.0   ;;  %s236_s23 = sld [smem:[#allocation2 + $0x6]] }
  0x11   :  { %v40_v4 = vshrl.u32 %v39_v0, 7  ;;  %s285_s29 = smov 0.0   ;;  %s232_s4 = sld [smem:[#allocation2 + $0x2]] }
  0x12   :  { %v38_v6 = vunpack.c.0.s8 %v37_v2  ;;  %s233_s5 = sld [smem:[#allocation2 + $0x3]]  ;;  %s24_s7 = sld [smem:[#allocation2]] }
  0x13   :  { %s234_s8 = sld [smem:[#allocation2 + $0x4]]  ;;  %s231_s9 = sld [smem:[#allocation2 + $0x1]] }
  0x14   :  { %v41_v7 = vsub.s32 %v38_v6, %v40_v4 }
  0x15   :  { %v102_v33 = vstv %s318_s1  ;;  %s237_s20 = sadd.f32 -1.0, %s318_s1 }
  0x16   :  { %v42_v9 = vrot.slane %v31_v3, %v41_v7  ;;  %v49_v10 = vrot.slane %v35_v5, %v41_v7  ;;  %v59_v14 = vrot.slane %v32_v8, %v41_v7  ;;  %v66_v19 = vrot.slane %v52_v13, %v41_v7 }
  0x17   :  { %254 = vrcp.f32 %v102_v33  ;;  %s184_s22 = smax.f32 %s284_s21, %s237_s20 }
  0x18   :  { %v50_v11 = vcombine.high %v42_v9, %v42_v9  ;;  %v51_v12 = vcombine.high %v49_v10, %v49_v10  ;;  %v78_v15 = vsel %vm77_vm0, %v42_v9, 0.0  ;;  %v81_v17 = vsel %vm77_vm0, %v49_v10, 0.0 }
  0x19   :  { %v67_v20 = vcombine.high %v59_v14, %v59_v14  ;;  %v85_v23 = vsel %vm77_vm0, %v59_v14, 0.0  ;;  %v68_v25 = vcombine.high %v66_v19, %v66_v19  ;;  %v89_v28 = vsel %vm77_vm0, %v66_v19, 0.0 }
  0x1a   :  { %v79_v16 = vsel %vm77_vm0, %v50_v11, 0.0  ;;  %v83_v21 = vsel %vm77_vm0, %v51_v12, 0.0 }
  0x1b   :  { %v80_v18 = vadd.f32 %v79_v16, %v78_v15  ;;  %v87_v26 = vsel %vm77_vm0, %v67_v20, 0.0  ;;  %v91_v30 = vsel %vm77_vm0, %v68_v25, 0.0  ;;  %v201_v20 = vstv %s232_s4 }
  0x1d   :  { %v82_v22 = vadd.f32 %v81_v17, %v80_v18 }
  0x1f   :  { %v84_v24 = vadd.f32 %v83_v21, %v82_v22 }
  0x21   :  { %v86_v27 = vadd.f32 %v85_v23, %v84_v24  ;;  %v255_v40 = vpop.eup %254  ;;  %v204_v23 = vstv %s233_s5 }
  0x23   :  { %v88_v29 = vadd.f32 %v87_v26, %v86_v27 }
  0x25   :  { %v90_v31 = vadd.f32 %v89_v28, %v88_v29  ;;  %v195_v28 = vstv %s24_s7  ;;  %v213_v29 = vstv %s234_s8 }
  0x27   :  { %v92_v32 = vadd.f32 %v91_v30, %v90_v31 }
  0x29   :  { %93 = vadd.xlane.f32.xlu0 %v92_v32 }
  0xb6   :  { %v94_v34 = vpop.xlane.xlu0 %93 }
  0xb7   :  { %v95_v35 = vrot.slane %v94_v34, 4 }
  0xb9   :  { %v96_v36 = vadd.f32 %v95_v35, %v94_v34  ;;  %v198_v34 = vstv %s231_s9 }
  0xbb   :  { %v97_v37 = vrot.slane %v96_v36, 2 }
  0xbd   :  { %v98_v38 = vadd.f32 %v97_v37, %v96_v36 }
  0xbf   :  { %v99_v39 = vrot.slane %v98_v38, 1 }
  0xc1   :  { %v100_v41 = vadd.f32 %v99_v39, %v98_v38 }
  0xc3   :  { %238 = vpush %v100_v41 }
  0xc4   :  { %240 = vpush %v255_v40 }
  0xf4   :  { %s239_s17 = spop %238 }
  0xf5   :  { %s241_s18 = spop %240 }
  0xf6   :  { %s321_s19 = smul.f32 %s241_s18, %s239_s17 }
  0xf8   :  { %v106_v42 = vstv %s321_s19  ;;  %s179_s24 = smul.f32 %s236_s23, %s321_s19 }
  0xf9   :  { %v324_v43 = vsub.f32 %v31_v3, %v106_v42  ;;  %v326_v44 = vsub.f32 %v32_v8, %v106_v42 }
  0xfa   :  { %s180_s25 = smul.f32 %s179_s24, %s321_s19 }
  0xfb   :  { %v109_v45 = vmul.f32 %v324_v43, %v324_v43  ;;  %v110_v46 = vmul.f32 %v326_v44, %v326_v44 }
  0xfd   :  { %v113_v47 = vcombine.high %v109_v45, %v109_v45  ;;  %v120_v48 = vrot.slane %v109_v45, %v41_v7  ;;  %v137_v51 = vrot.slane %v110_v46, %v41_v7  ;;  %v130_v55 = vcombine.high %v110_v46, %v110_v46 }
  0xff   :  { %v127_v49 = vrot.slane %v113_v47, %v41_v7  ;;  %v128_v50 = vcombine.high %v120_v48, %v120_v48  ;;  %v155_v52 = vsel %vm77_vm0, %v120_v48, 0.0  ;;  %v144_v59 = vrot.slane %v130_v55, %v41_v7 }
 0x100   :  { %v145_v60 = vcombine.high %v137_v51, %v137_v51  ;;  %v162_v63 = vsel %vm77_vm0, %v137_v51, 0.0  ;;  %v185_v7 = vstv %s184_s22 }
 0x101   :  { %v156_v53 = vsel %vm77_vm0, %v128_v50, 0.0  ;;  %v129_v54 = vcombine.high %v127_v49, %v127_v49  ;;  %v158_v57 = vsel %vm77_vm0, %v127_v49, 0.0  ;;  %v146_v1 = vcombine.high %v144_v59, %v144_v59 }
 0x102   :  { %v157_v56 = vadd.f32 %v156_v53, %v155_v52  ;;  %v164_v2 = vsel %vm77_vm0, %v145_v60, 0.0  ;;  %v166_v4 = vsel %vm77_vm0, %v144_v59, 0.0  ;;  %256 = vrcp.f32 %v185_v7 }
 0x103   :  { %v160_v61 = vsel %vm77_vm0, %v129_v54, 0.0  ;;  %v168_v6 = vsel %vm77_vm0, %v146_v1, 0.0 }
 0x104   :  { %v159_v58 = vadd.f32 %v158_v57, %v157_v56 }
 0x106   :  { %v161_v62 = vadd.f32 %v160_v61, %v159_v58 }
 0x108   :  { %v163_v0 = vadd.f32 %v162_v63, %v161_v62 }
 0x10a   :  { %v165_v3 = vadd.f32 %v164_v2, %v163_v0 }
 0x10c   :  { %v167_v5 = vadd.f32 %v166_v4, %v165_v3  ;;  %v257_v15 = vpop.eup %256 }
 0x10e   :  { %v169_v8 = vadd.f32 %v168_v6, %v167_v5 }
 0x110   :  { %170 = vadd.xlane.f32.xlu0 %v169_v8 }
 0x19d   :  { %v171_v9 = vpop.xlane.xlu0 %170 }
 0x19e   :  { %v172_v10 = vrot.slane %v171_v9, 4 }
 0x1a0   :  { %v173_v11 = vadd.f32 %v172_v10, %v171_v9 }
 0x1a2   :  { %v174_v12 = vrot.slane %v173_v11, 2 }
 0x1a4   :  { %v175_v13 = vadd.f32 %v174_v12, %v173_v11 }
 0x1a6   :  { %v176_v14 = vrot.slane %v175_v13, 1 }
 0x1a8   :  { %v177_v16 = vadd.f32 %v176_v14, %v175_v13 }
 0x1aa   :  { %242 = vpush %v177_v16 }
 0x1ab   :  { %244 = vpush %v257_v15 }
 0x1db   :  { %s243_s26 = spop %242 }
 0x1dc   :  { %s181_s27 = ssub.f32 %s243_s26, %s180_s25  ;;  %s245_s28 = spop %244 }
 0x1de   :  { %s182_s30 = smax.f32 %s285_s29, %s181_s27 }
 0x1df   :  { %s188_s3 = smul.f32 %s245_s28, %s182_s30 }
 0x1e1   :  { %v189_v17 = vstv %s188_s3 }
 0x1e2   :  { %258 = vrsqrt.f32 %v189_v17 }
 0x1ec   :  { %v259_v18 = vpop.eup %258 }
 0x1ed   :  { %246 = vpush %v259_v18 }
 0x21e   :  { %s247_s6 = spop %246 }
 0x21f   :  { %v192_v19 = vstv %s247_s6 }
 0x220   :  { %v193_v21 = vmul.f32 %v192_v19, %v324_v43  ;;  %v194_v22 = vmul.f32 %v192_v19, %v326_v44 }
 0x222   :  { %v202_v24 = vmul.f32 %v201_v20, %v193_v21  ;;  %v203_v25 = vmul.f32 %v201_v20, %v194_v22  ;;  %260 = vtanh.f32 %v193_v21  ;;  %v196_v31 = vmul.f32 %v195_v28, %v193_v21 }
 0x223   :  { %262 = vtanh.f32 %v194_v22  ;;  %v214_v32 = vmul.f32 %v213_v29, %v193_v21  ;;  %v197_v33 = vmul.f32 %v195_v28, %v194_v22  ;;  %v215_v35 = vmul.f32 %v213_v29, %v194_v22 }
 0x224   :  { %v205_v26 = vadd.f32 %v204_v23, %v202_v24  ;;  %v206_v27 = vadd.f32 %v204_v23, %v203_v25  ;;  %v199_v41 = vadd.f32 %v198_v34, %v196_v31 }
 0x225   :  { %v200_v43 = vadd.f32 %v198_v34, %v197_v33 }
 0x226   :  { %264 = vtanh.f32 %v205_v26 }
 0x227   :  { %266 = vtanh.f32 %v206_v27 }
 0x22c   :  { %v261_v30 = vpop.eup %260 }
 0x22d   :  { %v263_v36 = vpop.eup %262  ;;  %v218_v37 = vmul.f32 %v261_v30, %v214_v32 }
 0x22e   :  { %v219_v39 = vmul.f32 %v263_v36, %v215_v35 }
 0x22f   :  { %v220_v46 = vadd.f32 %v218_v37, %v193_v21 }
 0x230   :  { %v265_v38 = vpop.eup %264  ;;  %v221_v48 = vadd.f32 %v219_v39, %v194_v22 }
 0x231   :  { %v267_v40 = vpop.eup %266  ;;  %v209_v42 = vadd.f32 1.0, %v265_v38 }
 0x232   :  { %v210_v44 = vadd.f32 1.0, %v267_v40 }
 0x233   :  { %v211_v45 = vmul.f32 %v209_v42, %v199_v41 }
 0x234   :  { %v212_v47 = vmul.f32 %v210_v44, %v200_v43 }
 0x235   :  { %v222_v49 = vadd.f32 %v220_v46, %v211_v45 }
 0x236   :  { %v223_v50 = vadd.f32 %v221_v48, %v212_v47 }
 0x237   :  { %224 = vst [vmem:[%s353_s2] sm:$0xff] %v222_v49 }
 0x238   :  { %225 = vst [vmem:[%s353_s2 + $0x8] sm:$0xff] %v223_v50 }
 0x239   :  { %230 = vsyncpa [#allocation3], 1 }

</bundles_post_ra>
